<compile_context>
chip_gen: v5e
topology: v5e:2x2
jax: 0.10.0
libtpu: 0.0.40
codegen_flags: <defaults>
</compile_context>

<pallas_src>
import functools

import jax
import jax.numpy as jnp
import numpy as np
from jax.experimental import pallas as pl
from jax.experimental.pallas import tpu as pltpu


def _round_up(x: int, m: int) -> int:
    return -(-x // m) * m


def prototypes_kernel(x_ref, w_ref, o_ref, acc_ref):
    """One (tm, tn) output tile; accumulate over the K grid axis."""
    @pl.when(pl.program_id(2) == 0)
    def _():
        acc_ref[...] = jnp.zeros_like(acc_ref)

    acc_ref[...] += jnp.dot(x_ref[...], w_ref[...],
                            preferred_element_type=jnp.float32)

    @pl.when(pl.program_id(2) == pl.num_programs(2) - 1)
    def _():
        o_ref[...] = acc_ref[...].astype(o_ref.dtype)


@functools.partial(jax.jit, static_argnames=("tm", "tn", "tk"))
def prototypes_forward(x, weight, *, tm=128, tn=256, tk=512):
    """x: (B, output_dim); weight: (num_prototypes, output_dim)  (PyTorch Linear layout).

    Returns logits of shape (B, num_prototypes) == x @ weight.T.
    """
    B, K = x.shape
    N, Kw = weight.shape
    assert K == Kw, "weight/input feature-dim mismatch"

    # One-time transpose outside the kernel: every in-kernel dot is plain row-major.
    wt = weight.T  # (K, N)

    # Effective tile sizes: never larger than the (padded) problem, always layout-legal
    # (sublane multiple of 8, lane multiple of 128).
    tm_e = min(tm, _round_up(B, 8))
    tn_e = min(tn, _round_up(N, 128))
    tk_e = min(tk, _round_up(K, 128))

    Mp = _round_up(B, tm_e)
    Kp = _round_up(K, tk_e)
    Np = _round_up(N, tn_e)

    x_p = x if (Mp, Kp) == (B, K) else jnp.pad(x, ((0, Mp - B), (0, Kp - K)))
    w_p = wt if (Kp, Np) == (K, N) else jnp.pad(wt, ((0, Kp - K), (0, Np - N)))

    grid = (Mp // tm_e, Np // tn_e, Kp // tk_e)

    out = pl.pallas_call(
        prototypes_kernel,
        out_shape=jax.ShapeDtypeStruct((Mp, Np), x.dtype),
        grid_spec=pltpu.PrefetchScalarGridSpec(
            num_scalar_prefetch=0,
            grid=grid,
            in_specs=[
                pl.BlockSpec((tm_e, tk_e), lambda i, j, k: (i, k)),   # x tile
                pl.BlockSpec((tk_e, tn_e), lambda i, j, k: (k, j)),   # W^T tile
            ],
            out_specs=pl.BlockSpec((tm_e, tn_e), lambda i, j, k: (i, j)),
            scratch_shapes=[pltpu.VMEM((tm_e, tn_e), jnp.float32)],
        ),
        compiler_params=pltpu.CompilerParams(
            dimension_semantics=("parallel", "parallel", "arbitrary"),
            vmem_limit_bytes=64 * 1024 * 1024,
        ),
    )(x_p, w_p)

    return out[:B, :N]


def normalize_prototypes(weight):
    """Pure-JAX equivalent of Prototypes.normalize_prototypes (offline weight update,
    not part of the forward pass): L2-normalize each prototype row (dim=1, p=2)."""
    norm = jnp.maximum(jnp.linalg.norm(weight, axis=1, keepdims=True), 1e-12)
    return weight / norm


def _check(x, weight, **tiles):
    got = prototypes_forward(x, weight, **tiles)
    jax.block_until_ready(got)
    ref = np.asarray(x, dtype=np.float64) @ np.asarray(weight, dtype=np.float64).T
    np.testing.assert_allclose(np.asarray(got), ref, rtol=1e-3, atol=1e-3)


if __name__ == "__main__":
    key = jax.random.PRNGKey(0)

    # Case 1: tiny shapes consistent with the module (batch=16, output_dim=32, protos=48).
    k1, k2, k3, k4 = jax.random.split(key, 4)
    x_small = jax.random.normal(k1, (16, 32), jnp.float32)
    w_small = 0.02 * jax.random.normal(k2, (48, 32), jnp.float32)
    _check(x_small, w_small)

    # Case 2: exercises multi-step grid, K accumulation, and non-divisible batch padding.
    x_big = jax.random.normal(k3, (200, 256), jnp.float32)
    w_big = 0.02 * jax.random.normal(k4, (300, 256), jnp.float32)
    _check(x_big, w_big, tm=128, tn=128, tk=128)

    # Sanity: normalize_prototypes helper keeps forward semantics consistent.
    w_n = normalize_prototypes(w_small)
    _check(x_small, w_n)

    print("KERNEL_OK")
</pallas_src>

<mosaic_0001>
module attributes {stable_mosaic.version = 11 : i64} {
  func.func @prototypes_kernel(%arg0: i32, %arg1: i32, %arg2: i32, %arg3: memref<16x128xf32, #tpu.memory_space<vmem>>, %arg4: memref<128x128xf32, #tpu.memory_space<vmem>>, %arg5: memref<16x128xf32, #tpu.memory_space<vmem>>, %arg6: memref<16x128xf32, #tpu.memory_space<vmem>>) attributes {dimension_semantics = [#tpu.dimension_semantics<parallel>, #tpu.dimension_semantics<parallel>, #tpu.dimension_semantics<arbitrary>], iteration_bounds = array<i64: 1, 1, 1>, scalar_prefetch = 0 : i64, scratch_operands = 1 : i64, tpu.core_type = #tpu.core_type<tc>, window_params = [{transform_indices = @transform_0, window_bounds = array<i64: 16, 128>}, {transform_indices = @transform_1, window_bounds = array<i64: 128, 128>}, {transform_indices = @transform_2, window_bounds = array<i64: 16, 128>}]} {
    %c0_i32 = arith.constant 0 : i32
    %0 = arith.cmpi eq, %arg2, %c0_i32 : i32
    %1 = arith.extui %0 : i1 to i32
    %c0_i32_0 = arith.constant 0 : i32
    %2 = arith.cmpi ne, %1, %c0_i32_0 : i32
    scf.if %2 {
      %cst_10 = arith.constant 0.000000e+00 : f32
      %12 = vector.broadcast %cst_10 : f32 to vector<16x128xf32>
      %c0_11 = arith.constant 0 : index
      %c0_12 = arith.constant 0 : index
      %13 = vector.load %arg6[%c0_11, %c0_12] : memref<16x128xf32, #tpu.memory_space<vmem>>, vector<16x128xf32>
      tpu.vector_store %arg6[%c0_11, %c0_12], %12 {strides = array<i32>} : memref<16x128xf32, #tpu.memory_space<vmem>>, vector<16x128xf32>,
    } else {
    }
    %c0 = arith.constant 0 : index
    %c0_1 = arith.constant 0 : index
    %3 = vector.load %arg6[%c0, %c0_1] : memref<16x128xf32, #tpu.memory_space<vmem>>, vector<16x128xf32>
    %c0_2 = arith.constant 0 : index
    %c0_3 = arith.constant 0 : index
    %4 = vector.load %arg3[%c0_2, %c0_3] : memref<16x128xf32, #tpu.memory_space<vmem>>, vector<16x128xf32>
    %c0_4 = arith.constant 0 : index
    %c0_5 = arith.constant 0 : index
    %5 = vector.load %arg4[%c0_4, %c0_5] : memref<128x128xf32, #tpu.memory_space<vmem>>, vector<128x128xf32>
    %cst = arith.constant dense<0.000000e+00> : vector<16x128xf32>
    %6 = tpu.matmul %4, %5, %cst {dimension_numbers = #tpu.dot_dimension_numbers<[1], [0], [0], [1], [0, 0, 1, 1], [], []>} : vector<16x128xf32>, vector<128x128xf32>, vector<16x128xf32> -> vector<16x128xf32>
    %7 = arith.addf %3, %6 : vector<16x128xf32>
    %c0_6 = arith.constant 0 : index
    %c0_7 = arith.constant 0 : index
    %8 = vector.load %arg6[%c0_6, %c0_7] : memref<16x128xf32, #tpu.memory_space<vmem>>, vector<16x128xf32>
    tpu.vector_store %arg6[%c0_6, %c0_7], %7 {strides = array<i32>} : memref<16x128xf32, #tpu.memory_space<vmem>>, vector<16x128xf32>,
    %c0_i32_8 = arith.constant 0 : i32
    %9 = arith.cmpi eq, %arg2, %c0_i32_8 : i32
    %10 = arith.extui %9 : i1 to i32
    %c0_i32_9 = arith.constant 0 : i32
    %11 = arith.cmpi ne, %10, %c0_i32_9 : i32
    scf.if %11 {
      %c0_10 = arith.constant 0 : index
      %c0_11 = arith.constant 0 : index
      %12 = vector.load %arg6[%c0_10, %c0_11] : memref<16x128xf32, #tpu.memory_space<vmem>>, vector<16x128xf32>
      %c0_12 = arith.constant 0 : index
      %c0_13 = arith.constant 0 : index
      %13 = vector.load %arg5[%c0_12, %c0_13] : memref<16x128xf32, #tpu.memory_space<vmem>>, vector<16x128xf32>
      tpu.vector_store %arg5[%c0_12, %c0_13], %12 {strides = array<i32>} : memref<16x128xf32, #tpu.memory_space<vmem>>, vector<16x128xf32>,
    } else {
    }
    return
  }
  func.func @transform_0(%arg0: i32, %arg1: i32, %arg2: i32) -> (i32, i32) {
    %c0_i32 = arith.constant 0 : i32
    return %arg0, %arg2 : i32, i32
  }
  func.func @transform_1(%arg0: i32, %arg1: i32, %arg2: i32) -> (i32, i32) {
    %c0_i32 = arith.constant 0 : i32
    return %arg2, %arg1 : i32, i32
  }
  func.func @transform_2(%arg0: i32, %arg1: i32, %arg2: i32) -> (i32, i32) {
    %c0_i32 = arith.constant 0 : i32
    return %arg0, %arg1 : i32, i32
  }
}

</mosaic_0001>

<bundles_post_ra>
// kernel: prototypes_forward.1
= control target key start
LH: loop header
LB: loop body
LE: loop exit
PB: predicated region body
PF: predicated region fallthrough
CT: control target
= control target key end

     0   :  { %s210_s0 = inlined_call_operand.vmem [shape: f32[16,128], index: 0, kind: input, shape index: {}]   ;;  %s211_s1 = inlined_call_operand.vmem [shape: f32[128,128], index: 1, kind: input, shape index: {}]   ;;  %s212_s2 = inlined_call_operand.hbm [shape: f32[16,128], index: 2, kind: output, shape index: {}]  }
   0x1   :  { %v37_v0 = vld [vmem:[%s211_s1 + $0x78] sm:$0xff]  ;;  %v36_v1 = vld [vmem:[%s211_s1 + $0x70] sm:$0xff]  ;;  %v35_v2 = vld [vmem:[%s211_s1 + $0x68] sm:$0xff] }
   0x2   :  { %38 = vmatpush.msra.mxu0 %v37_v0  ;;  %90 = vmatpush.msra.mxu1 %v37_v0  ;;  %v34_v3 = vld [vmem:[%s211_s1 + $0x60] sm:$0xff]  ;;  %v33_v4 = vld [vmem:[%s211_s1 + $0x58] sm:$0xff] }
   0x4   :  { %39 = vmatpush.msra.mxu0 %v36_v1  ;;  %91 = vmatpush.msra.mxu1 %v36_v1 }
   0x6   :  { %40 = vmatpush.msra.mxu0 %v35_v2  ;;  %92 = vmatpush.msra.mxu1 %v35_v2 }
   0x7   :  { %7 = vsyncpa [#allocation4], 0  ;;  %v32_v5 = vld [vmem:[%s211_s1 + $0x50] sm:$0xff]  ;;  %v31_v6 = vld [vmem:[%s211_s1 + $0x48] sm:$0xff]  ;;  %s135_s17 = smov [#allocation3]   ;;  %s136_s21 = smov 128  }
   0x8   :  { %41 = vmatpush.msra.mxu0 %v34_v3  ;;  %93 = vmatpush.msra.mxu1 %v34_v3  ;;  %v30_v7 = vld [vmem:[%s211_s1 + $0x40] sm:$0xff]  ;;  %v29_v8 = vld [vmem:[%s211_s1 + $0x38] sm:$0xff]  ;;  %v28_v9 = vld [vmem:[%s211_s1 + $0x30] sm:$0xff]  ;;  %s76_s18 = sshll.u32 %s135_s17, 4  ;;  %s137_s22 = smov 8   ;;  %s77_s18 = int_to_ptr.vmem [resolvable:$true] %s76_s18 }
   0x9   :  { %v27_v10 = vld [vmem:[%s211_s1 + $0x28] sm:$0xff]  ;;  %v26_v11 = vld [vmem:[%s211_s1 + $0x20] sm:$0xff]  ;;  %v25_v12 = vld [vmem:[%s211_s1 + $0x18] sm:$0xff] }
   0xa   :  { %42 = vmatpush.msra.mxu0 %v33_v4  ;;  %94 = vmatpush.msra.mxu1 %v33_v4  ;;  %v24_v13 = vld [vmem:[%s211_s1 + $0x10] sm:$0xff]  ;;  %v23_v14 = vld [vmem:[%s211_s1 + $0x8] sm:$0xff]  ;;  %v22_v15 = vld [vmem:[%s211_s1] sm:$0xff]  ;;  %s78_s1 = sshll.u32 %s212_s2, 4  ;;  %s79_s1 = int_to_ptr.hbm [resolvable:$true] %s78_s1 }
   0xb   :  { %v20_v16 = vld [vmem:[%s210_s0] sm:$0xff]  ;;  %v21_v17 = vld [vmem:[%s210_s0 + $0x8] sm:$0xff] }
   0xc   :  { %43 = vmatpush.msra.mxu0 %v32_v5  ;;  %95 = vmatpush.msra.mxu1 %v32_v5 }
   0xe   :  { %44 = vmatpush.msra.mxu0 %v31_v6  ;;  %96 = vmatpush.msra.mxu1 %v31_v6 }
  0x10   :  { %45 = vmatpush.msra.mxu0 %v30_v7  ;;  %97 = vmatpush.msra.mxu1 %v30_v7 }
  0x12   :  { %46 = vmatpush.msra.mxu0 %v29_v8  ;;  %98 = vmatpush.msra.mxu1 %v29_v8 }
  0x14   :  { %47 = vmatpush.msra.mxu0 %v28_v9  ;;  %99 = vmatpush.msra.mxu1 %v28_v9 }
  0x16   :  { %48 = vmatpush.msra.mxu0 %v27_v10  ;;  %100 = vmatpush.msra.mxu1 %v27_v10 }
  0x18   :  { %49 = vmatpush.msra.mxu0 %v26_v11  ;;  %101 = vmatpush.msra.mxu1 %v26_v11 }
  0x1a   :  { %50 = vmatpush.msra.mxu0 %v25_v12  ;;  %102 = vmatpush.msra.mxu1 %v25_v12 }
  0x1c   :  { %51 = vmatpush.msra.mxu0 %v24_v13  ;;  %103 = vmatpush.msra.mxu1 %v24_v13 }
  0x1e   :  { %52 = vmatpush.msra.mxu0 %v23_v14  ;;  %104 = vmatpush.msra.mxu1 %v23_v14 }
  0x20   :  { %53 = vmatpush.msra.mxu0 %v22_v15  ;;  %105 = vmatpush.msra.mxu1 %v22_v15 }
  0x21   :  { %54 = vmatmul.f32.vlgmr.msra.gmra.mxu0 %v20_v16  ;;  %57 = vmatmul.f32.vlgmr.msra.gmra.mxu1 %v21_v17 }
  0x9e   :  { %v55_v18 = vpop.f32.mrf.mxu0  ;;  %v58_v19 = vpop.f32.mrf.mxu1 }
  0x9f   :  { %70 = vst [vmem:[#allocation3] sm:$0xff] %v55_v18 }
  0xa0   :  { %71 = vst [vmem:[#allocation3 + $0x8] sm:$0xff] %v58_v19 }
  0xa1   :  { %84 = dma.vmem_to_hbm [thread:$0]  %s77_s18, 256, %s79_s1, [#allocation4], %s136_s21, %s136_s21, %s137_s22  }
  0xa2   :  { %133 = dma.done.wait [#allocation4], 256  }
  0xa3   :  { %134 = vsyncadd [#allocation4], 4294967040 }
  0xa4   :  { %89 = vsyncpa [#allocation4], 1 }

</bundles_post_ra>
